<compile_context>
chip_gen: v7x
topology: tpu7x:2x2x1
jax: 0.10.0
libtpu: 0.0.40
codegen_flags: <defaults>
</compile_context>

<pallas_src>
import jax
import jax.numpy as jnp
from jax.experimental import pallas as pl
from jax.experimental.pallas import tpu as pltpu

_LANE = 128                  # TPU lane width (last tile dim)
_SPLIT_MIN_ROWS = 2048       # above this, force >=2 grid blocks (v7x dual-TC)
_VMEM_BUDGET_CAP = 32 << 20  # cap for the 6 live (double-buffered) tile buffers


def _round_up(a, b):
    return -(-a // b) * b


def _select_row_tile(rows, itemsize):
    """Pick the row tile TR and an explicit VMEM limit for the (rows, 128) slab."""
    row_align = max(8, 32 // itemsize)  # sublane packing multiple (8 f32, 16 bf16)

    # Gate the tile on the chip's actual VMEM (64 MiB on v7x, 128 MiB v5e/v6e).
    try:
        vmem_cap = pltpu.get_tpu_info().vmem_capacity_bytes
    except Exception:
        vmem_cap = 64 << 20  # conservative fallback (v7x physical)

    # 6 live buffers: (1 input + 2 outputs) x double-buffering.
    budget = min(vmem_cap // 2, _VMEM_BUDGET_CAP)
    tr_max = max(row_align, (budget // (6 * _LANE * itemsize)) // row_align * row_align)

    if rows <= tr_max:
        if rows > _SPLIT_MIN_ROWS:
            # At least 2 grid blocks so dimension_semantics=("parallel",) can
            # shard the row grid across v7x's two TensorCores.
            tr = min(tr_max, _round_up(pl.cdiv(rows, 2), row_align))
        else:
            tr = rows  # single full-extent block; per-step overhead dominates a split
    else:
        tr = tr_max

    footprint = 6 * tr * _LANE * itemsize
    vmem_limit = int(min(vmem_cap, max(footprint + (4 << 20), 16 << 20)))
    return tr, vmem_limit


def _quantizer_kernel_tpu(seed_ref, x_ref, noise_ref, hard_ref):
    """noise = x + U[-0.5, 0.5) (on-chip PRNG), hard = round(x)."""
    # Multi-arg seeding hashes (call seed, grid step) together -> independent
    # streams per tile and no overlap between nearby call seeds.
    pltpu.prng_seed(seed_ref[0], pl.program_id(0))

    xf = x_ref[...].astype(jnp.float32)  # widen once (bf16 inputs unpacked once)

    bits = pltpu.bitcast(pltpu.prng_random_bits(xf.shape), jnp.uint32)
    # Mantissa trick: top 23 random bits -> f32 in [1.0, 2.0); minus 1.5 gives
    # U[-0.5, 0.5) without an int->float convert.
    u = pltpu.bitcast((bits >> 9) | jnp.uint32(0x3F800000), jnp.float32) - jnp.float32(1.5)

    noise_ref[...] = (xf + u).astype(noise_ref.dtype)
    hard_ref[...] = jnp.round(xf).astype(hard_ref.dtype)


def _quantizer_kernel_portable(x_ref, u_ref, noise_ref, hard_ref):
    """Fallback for non-TPU backends: uniform noise U[0,1) is passed in."""
    xf = x_ref[...].astype(jnp.float32)
    noise_ref[...] = (xf + (u_ref[...] - jnp.float32(0.5))).astype(noise_ref.dtype)
    hard_ref[...] = jnp.round(xf).astype(hard_ref.dtype)


def _run_slab(x2, seed, tr, vmem_limit):
    """Run the quantizer kernel over a lane-dense (rows, 128) slab."""
    rows = x2.shape[0]
    dtype = x2.dtype
    itemsize = jnp.dtype(dtype).itemsize
    grid = (pl.cdiv(rows, tr),)

    out_shape = (
        jax.ShapeDtypeStruct((rows, _LANE), dtype),
        jax.ShapeDtypeStruct((rows, _LANE), dtype),
    )
    compiler_params = pltpu.CompilerParams(
        dimension_semantics=("parallel",),
        vmem_limit_bytes=vmem_limit,
    )
    cost = pl.CostEstimate(
        flops=4 * rows * _LANE,
        transcendentals=0,
        bytes_accessed=3 * rows * _LANE * itemsize,
    )

    if jax.default_backend() == "tpu":
        grid_spec = pltpu.PrefetchScalarGridSpec(
            num_scalar_prefetch=1,
            grid=grid,
            in_specs=[pl.BlockSpec((tr, _LANE), lambda i, seed_ref: (i, 0))],
            out_specs=(
                pl.BlockSpec((tr, _LANE), lambda i, seed_ref: (i, 0)),
                pl.BlockSpec((tr, _LANE), lambda i, seed_ref: (i, 0)),
            ),
        )
        seed_arr = jnp.asarray([seed], dtype=jnp.int32)
        # Note: input_output_aliases (donating x2 -> hard) would only save HBM
        # footprint, not bandwidth; omitted to keep the call simple.
        return pl.pallas_call(
            _quantizer_kernel_tpu,
            out_shape=out_shape,
            grid_spec=grid_spec,
            compiler_params=compiler_params,
            cost_estimate=cost,
        )(seed_arr, x2)

    # TODO(synk): pltpu.prng_seed / prng_random_bits have no CPU/interpret
    # lowering, so off-TPU the uniform noise is generated on the host and
    # streamed in as an extra input.
    u = jax.random.uniform(jax.random.PRNGKey(seed), (rows, _LANE), dtype=jnp.float32)
    return pl.pallas_call(
        _quantizer_kernel_portable,
        out_shape=out_shape,
        grid=grid,
        in_specs=[
            pl.BlockSpec((tr, _LANE), lambda i: (i, 0)),
            pl.BlockSpec((tr, _LANE), lambda i: (i, 0)),
        ],
        out_specs=(
            pl.BlockSpec((tr, _LANE), lambda i: (i, 0)),
            pl.BlockSpec((tr, _LANE), lambda i: (i, 0)),
        ),
        compiler_params=compiler_params,
        cost_estimate=cost,
    )(x2, u)


def quantizer_forward(x, seed=0):
    """Pallas equivalent of Quantizer.forward. Returns (noise, hard)."""
    orig_shape = x.shape
    dtype = x.dtype
    n = x.size
    itemsize = jnp.dtype(dtype).itemsize

    flat = x.reshape(-1)
    n_main = (n // _LANE) * _LANE
    tail = n - n_main

    if n_main == 0:
        # Tiny (<128-element) input: a kernel launch is not worth it.
        u = jax.random.uniform(jax.random.PRNGKey(seed), orig_shape, dtype=jnp.float32)
        noise = (x.astype(jnp.float32) + u - jnp.float32(0.5)).astype(dtype)
        return noise, jnp.round(x)

    rows = n_main // _LANE
    tr, vmem_limit = _select_row_tile(rows, itemsize)
    x2 = (flat[:n_main] if tail else flat).reshape(rows, _LANE)

    noise2, hard2 = _run_slab(x2, seed, tr, vmem_limit)

    if tail == 0:
        # Common aligned NCHW case: pure reshape, no extra HBM passes.
        return noise2.reshape(orig_shape), hard2.reshape(orig_shape)

    # TODO(synk): the <128-element tail is handled with plain jnp (avoids the
    # old whole-input pad pass); the final concatenate still re-materializes
    # the outputs once — removing that would need a manual-DMA (pl.ANY) tail path.
    xt = flat[n_main:]
    ut = jax.random.uniform(
        jax.random.PRNGKey(seed ^ 0x5DEECE66), (tail,), dtype=jnp.float32)
    noise_t = (xt.astype(jnp.float32) + ut - jnp.float32(0.5)).astype(dtype)
    hard_t = jnp.round(xt)
    noise = jnp.concatenate([noise2.reshape(-1), noise_t]).reshape(orig_shape)
    hard = jnp.concatenate([hard2.reshape(-1), hard_t]).reshape(orig_shape)
    return noise, hard


if __name__ == "__main__":
    key = jax.random.PRNGKey(0)
    # NCHW input: batch=2, channels=4, spatial=16x16
    x = jax.random.normal(key, (2, 4, 16, 16), dtype=jnp.float32) * 3.0

    noise, hard = quantizer_forward(x, seed=0)
    jax.block_until_ready((noise, hard))

    # Sanity checks of the forward semantics.
    assert noise.shape == x.shape and hard.shape == x.shape
    assert noise.dtype == x.dtype and hard.dtype == x.dtype
    assert jnp.allclose(hard, jnp.round(x))
    diff = noise - x
    eps = 1e-4  # tolerance for f32 rounding of (x + u)
    assert bool(jnp.all(diff >= -0.5 - eps)) and bool(jnp.all(diff < 0.5 + eps))

    print("KERNEL_OK")
</pallas_src>

<mosaic_0001>
module attributes {stable_mosaic.version = 11 : i64} {
  func.func @_quantizer_kernel_portable(%arg0: i32, %arg1: memref<16x128xf32, #tpu.memory_space<vmem>>, %arg2: memref<16x128xf32, #tpu.memory_space<vmem>>, %arg3: memref<16x128xf32, #tpu.memory_space<vmem>>, %arg4: memref<16x128xf32, #tpu.memory_space<vmem>>) attributes {dimension_semantics = [#tpu.dimension_semantics<parallel>], iteration_bounds = array<i64: 1>, scalar_prefetch = 0 : i64, scratch_operands = 0 : i64, tpu.core_type = #tpu.core_type<tc>, window_params = [{transform_indices = @transform_0, window_bounds = array<i64: 16, 128>}, {transform_indices = @transform_1, window_bounds = array<i64: 16, 128>}, {transform_indices = @transform_2, window_bounds = array<i64: 16, 128>}, {transform_indices = @transform_3, window_bounds = array<i64: 16, 128>}]} {
    %c0 = arith.constant 0 : index
    %c0_0 = arith.constant 0 : index
    %0 = vector.load %arg1[%c0, %c0_0] : memref<16x128xf32, #tpu.memory_space<vmem>>, vector<16x128xf32>
    %c0_1 = arith.constant 0 : index
    %c0_2 = arith.constant 0 : index
    %1 = vector.load %arg2[%c0_1, %c0_2] : memref<16x128xf32, #tpu.memory_space<vmem>>, vector<16x128xf32>
    %cst = arith.constant 5.000000e-01 : f32
    %2 = vector.broadcast %cst : f32 to vector<16x128xf32>
    %3 = arith.subf %1, %2 : vector<16x128xf32>
    %4 = arith.addf %0, %3 : vector<16x128xf32>
    %c0_3 = arith.constant 0 : index
    %c0_4 = arith.constant 0 : index
    %5 = vector.load %arg3[%c0_3, %c0_4] : memref<16x128xf32, #tpu.memory_space<vmem>>, vector<16x128xf32>
    tpu.vector_store %arg3[%c0_3, %c0_4], %4 {strides = array<i32>} : memref<16x128xf32, #tpu.memory_space<vmem>>, vector<16x128xf32>,
    %6 = math.roundeven %0 : vector<16x128xf32>
    %c0_5 = arith.constant 0 : index
    %c0_6 = arith.constant 0 : index
    %7 = vector.load %arg4[%c0_5, %c0_6] : memref<16x128xf32, #tpu.memory_space<vmem>>, vector<16x128xf32>
    tpu.vector_store %arg4[%c0_5, %c0_6], %6 {strides = array<i32>} : memref<16x128xf32, #tpu.memory_space<vmem>>, vector<16x128xf32>,
    return
  }
  func.func @transform_0(%arg0: i32) -> (i32, i32) {
    %c0_i32 = arith.constant 0 : i32
    %c0_i32_0 = arith.constant 0 : i32
    return %arg0, %c0_i32 : i32, i32
  }
  func.func @transform_1(%arg0: i32) -> (i32, i32) {
    %c0_i32 = arith.constant 0 : i32
    %c0_i32_0 = arith.constant 0 : i32
    return %arg0, %c0_i32 : i32, i32
  }
  func.func @transform_2(%arg0: i32) -> (i32, i32) {
    %c0_i32 = arith.constant 0 : i32
    %c0_i32_0 = arith.constant 0 : i32
    return %arg0, %c0_i32 : i32, i32
  }
  func.func @transform_3(%arg0: i32) -> (i32, i32) {
    %c0_i32 = arith.constant 0 : i32
    %c0_i32_0 = arith.constant 0 : i32
    return %arg0, %c0_i32 : i32, i32
  }
}

</mosaic_0001>

<bundles_post_ra>
// kernel: tpu_custom_call.1
= control target key start
LH: loop header
LB: loop body
LE: loop exit
PB: predicated region body
PF: predicated region fallthrough
CT: control target
= control target key end

     0   :  { %9 = vsyncpa [#allocation3], 0  ;;  %s290_s0 = inlined_call_operand.hbm [shape: f32[16,128], index: 0, kind: input, shape index: {}]   ;;  %s291_s1 = inlined_call_operand.hbm [shape: f32[16,128], index: 1, kind: input, shape index: {}]   ;;  %s292_s2 = inlined_call_operand.hbm [shape: f32[16,128], index: 2, kind: output, shape index: {0}]   ;;  %s293_s3 = inlined_call_operand.hbm [shape: f32[16,128], index: 3, kind: output, shape index: {1}]  }
   0x1   :  { %10 = vsyncpa [#allocation6], 0 }
   0x2   :  { %11 = vsyncpa [#allocation4], 0 }
   0x3   :  { %12 = vsyncpa [#allocation9], 0  ;;  %s197_s12 = smov [#allocation2]   ;;  %s101_s16 = scalar_lea.hbm %s290_s0, 256 }
   0x4   :  { %s18_s13 = sshll.u32 %s197_s12, 4  ;;  %p102_p0 = scmp.ne.s32.totalorder %s290_s0, %s101_s16  ;;  %s19_s13 = int_to_ptr.vmem [resolvable:$true] %s18_s13 }
   0x5   :  { %p105_p1 = scmp.lt.u32.totalorder %s101_s16, %s290_s0 }
   0x7   :  { %p107_p2 = pnand %p105_p1, %p102_p0 }
   0x9   :  { %110 = shalt.err (!%p107_p2)
}
   0xa   :  { %s111_s21 = scalar_lea.vmem %s19_s13, 256  ;;  %p116_p4 = scmp.lt.s32.totalorder %s19_s13, %s19_s13 }
   0xb   :  { %p112_p3 = scmp.ne.s32.totalorder %s19_s13, %s111_s21  ;;  %p117_p5 = scmp.lt.s32.totalorder %s111_s21, %s111_s21 }
   0xd   :  { %p118_p6 = por %p117_p5, %p116_p4 }
   0xf   :  { %p119_p7 = pnand %p118_p6, %p112_p3 }
  0x11   :  { %122 = shalt.err (!%p119_p7)
}
  0x12   :  { %s198_s22 = smov 128   ;;  %s199_s23 = smov 8  }
  0x13   :  { %24 = dma.hbm_to_vmem [thread:$0]  %s290_s0, 256, %s19_s13, [#allocation3], %s198_s22, %s198_s22, %s199_s23  }
  0x14   :  { %s200_s26 = smov [#allocation5]   ;;  %s123_s30 = scalar_lea.hbm %s291_s1, 256 }
  0x15   :  { %s30_s27 = sshll.u32 %s200_s26, 4  ;;  %p124_p8 = scmp.ne.s32.totalorder %s291_s1, %s123_s30  ;;  %s31_s27 = int_to_ptr.vmem [resolvable:$true] %s30_s27 }
  0x16   :  { %p127_p9 = scmp.lt.u32.totalorder %s123_s30, %s291_s1 }
  0x18   :  { %p129_p10 = pnand %p127_p9, %p124_p8 }
  0x1a   :  { %132 = shalt.err (!%p129_p10)
}
  0x1b   :  { %s133_s8 = scalar_lea.vmem %s31_s27, 256  ;;  %p138_p12 = scmp.lt.s32.totalorder %s31_s27, %s31_s27 }
  0x1c   :  { %p134_p11 = scmp.ne.s32.totalorder %s31_s27, %s133_s8  ;;  %p139_p13 = scmp.lt.s32.totalorder %s133_s8, %s133_s8 }
  0x1e   :  { %p140_p0 = por %p139_p13, %p138_p12 }
  0x20   :  { %p141_p1 = pnand %p140_p0, %p134_p11 }
  0x22   :  { %144 = shalt.err (!%p141_p1)
}
  0x23   :  { %36 = dma.hbm_to_vmem [thread:$0]  %s291_s1, 256, %s31_s27, [#allocation6], %s198_s22, %s198_s22, %s199_s23  }
  0x24   :  { %189 = dma.done.wait [#allocation3], 256  }
  0x25   :  { %190 = vsyncadd [#allocation3], 4294967040 }
  0x26   :  { %191 = dma.done.wait [#allocation6], 256  }
  0x27   :  { %192 = vsyncadd [#allocation6], 4294967040  ;;  %s201_s10 = smov [#allocation8]   ;;  %v43_v0 = vld [vmem:[#allocation2] sm:$0xff]  ;;  %v45_v1 = vld [vmem:[#allocation5] sm:$0xff]  ;;  %s202_s12 = smov [#allocation7]  }
  0x28   :  { %s74_s11 = sshll.u32 %s201_s10, 4  ;;  %v44_v2 = vld [vmem:[#allocation2 + $0x8] sm:$0xff]  ;;  %s62_s13 = sshll.u32 %s202_s12, 4  ;;  %v91_v3 = vadd.f32 -0.5, %v45_v1  ;;  %v46_v4 = vld [vmem:[#allocation5 + $0x8] sm:$0xff]  ;;  %v93_v5 = vround.rtne.f32 %v43_v0  ;;  %s75_s11 = int_to_ptr.vmem [resolvable:$true] %s74_s11  ;;  %s253_s13 = int_to_ptr.vmem [resolvable:$true] %s62_s13 }
  0x29   :  { %v94_v6 = vround.rtne.f32 %v44_v2  ;;  %v92_v7 = vadd.f32 -0.5, %v46_v4  ;;  %s145_s1 = scalar_lea.vmem %s75_s11, 256  ;;  %p150_p3 = scmp.lt.s32.totalorder %s75_s11, %s75_s11 }
  0x2a   :  { %v49_v8 = vadd.f32 %v91_v3, %v43_v0  ;;  %55 = vst [vmem:[#allocation8] sm:$0xff] %v93_v5  ;;  %p146_p2 = scmp.ne.s32.totalorder %s75_s11, %s145_s1  ;;  %p151_p4 = scmp.lt.s32.totalorder %s145_s1, %s145_s1 }
  0x2b   :  { %56 = vst [vmem:[#allocation8 + $0x8] sm:$0xff] %v94_v6  ;;  %v50_v9 = vadd.f32 %v92_v7, %v44_v2 }
  0x2c   :  { %p152_p5 = por %p151_p4, %p150_p3 }
  0x2e   :  { %p153_p6 = pnand %p152_p5, %p146_p2 }
  0x30   :  { %156 = shalt.err (!%p153_p6)
}
  0x31   :  { %s157_s16 = scalar_lea.hbm %s293_s3, 256 }
  0x32   :  { %p158_p7 = scmp.ne.s32.totalorder %s293_s3, %s157_s16  ;;  %p161_p8 = scmp.lt.u32.totalorder %s157_s16, %s293_s3 }
  0x34   :  { %p163_p9 = pnand %p161_p8, %p158_p7 }
  0x36   :  { %166 = shalt.err (!%p163_p9)
}
  0x37   :  { %80 = dma.vmem_to_hbm [thread:$0]  %s75_s11, 256, %s293_s3, [#allocation9], %s198_s22, %s198_s22, %s199_s23   ;;  %51 = vst [vmem:[#allocation7] sm:$0xff] %v49_v8  ;;  %52 = vst [vmem:[#allocation7 + $0x8] sm:$0xff] %v50_v9 }
  0x38   :  { %s167_s25 = scalar_lea.vmem %s253_s13, 256  ;;  %p172_p11 = scmp.lt.s32.totalorder %s253_s13, %s253_s13 }
  0x39   :  { %p168_p10 = scmp.ne.s32.totalorder %s253_s13, %s167_s25  ;;  %p173_p12 = scmp.lt.s32.totalorder %s167_s25, %s167_s25 }
  0x3b   :  { %p174_p13 = por %p173_p12, %p172_p11 }
  0x3d   :  { %p175_p0 = pnand %p174_p13, %p168_p10 }
  0x3f   :  { %178 = shalt.err (!%p175_p0)
}
  0x40   :  { %s179_s28 = scalar_lea.hbm %s292_s2, 256 }
  0x41   :  { %p180_p1 = scmp.ne.s32.totalorder %s292_s2, %s179_s28  ;;  %p183_p2 = scmp.lt.u32.totalorder %s179_s28, %s292_s2 }
  0x43   :  { %p185_p3 = pnand %p183_p2, %p180_p1 }
  0x45   :  { %188 = shalt.err (!%p185_p3)
}
  0x46   :  { %68 = dma.vmem_to_hbm [thread:$0]  %s253_s13, 256, %s292_s2, [#allocation4], %s198_s22, %s198_s22, %s199_s23  }
  0x47   :  { %193 = dma.done.wait [#allocation4], 256  }
  0x48   :  { %194 = vsyncadd [#allocation4], 4294967040 }
  0x49   :  { %195 = dma.done.wait [#allocation9], 256  }
  0x4a   :  { %196 = vsyncadd [#allocation9], 4294967040 }
  0x4b   :  { %87 = vsyncpa [#allocation3], 1 }
  0x4c   :  { %88 = vsyncpa [#allocation6], 1 }
  0x4d   :  { %89 = vsyncpa [#allocation4], 1 }
  0x4e   :  { %90 = vsyncpa [#allocation9], 1 }

</bundles_post_ra>
